<compile_context>
chip_gen: v6e
topology: v6e:2x2x1
jax: 0.10.0
libtpu: 0.0.40
codegen_flags: <defaults>
</compile_context>

<pallas_src>
import jax
import jax.numpy as jnp
from jax.experimental import pallas as pl
from jax.experimental.pallas import tpu as pltpu


# ----------------------------------------------------------------------------
# helpers
# ----------------------------------------------------------------------------
def _round_up(x, m):
    return ((x + m - 1) // m) * m


def _cdiv(a, b):
    return (a + b - 1) // b


def _pick_tile(dim, candidates):
    for c in candidates:
        if c <= dim and dim % c == 0:
            return c
    return dim


def _pick_batch_block(Bp):
    """Largest block <= 128 that still yields >= 2 batch blocks (so both v7x
    TensorCores get work on the "parallel" batch axis); single block only for
    tiny batches.  Bp is a multiple of 16, so candidates always divide."""
    for bb in (128, 64, 32, 16):
        if bb < Bp and Bp % bb == 0:
            return bb
    return Bp


def _vmem_limit(nbytes):
    # 2x slack over the computed residency, clamped to [32 MiB, 64 MiB] so the
    # limit is valid on v7x (64 MiB physical) and never below the default.
    return int(min(64 * 1024 * 1024, max(32 * 1024 * 1024, 2 * nbytes)))


def _pad_gate_rows(w, h, hp):
    """w: (4*h, X) with PyTorch gate blocks [i; f; g; o] -> (4*hp, X), each
    gate block zero-padded from h to hp rows."""
    blocks = jnp.split(w, 4, axis=0)                      # 4 x (h, X)
    blocks = [jnp.pad(b, ((0, hp - h), (0, 0))) for b in blocks]
    return jnp.concatenate(blocks, axis=0)                # (4*hp, X)


# ----------------------------------------------------------------------------
# Kernel 1: tiled matmul + bias with K reduction axis and f32 VMEM accumulator
#   used for the hoisted input projection and the hoisted FC/vocab projection
# ----------------------------------------------------------------------------
def _matmul_bias_kernel(a_ref, b_ref, bias_ref, o_ref, acc_ref):
    @pl.when(pl.program_id(2) == 0)
    def _():
        acc_ref[...] = jnp.zeros_like(acc_ref)

    acc_ref[...] += jnp.dot(a_ref[...], b_ref[...],
                            preferred_element_type=jnp.float32)

    @pl.when(pl.program_id(2) == pl.num_programs(2) - 1)
    def _():
        o_ref[...] = (acc_ref[...] + bias_ref[...].astype(jnp.float32)
                      ).astype(o_ref.dtype)


def _matmul_bias(a, b, bias, out_dtype):
    """a: (M, K) bf16, b: (K, N) bf16, bias: (1, N) f32 -> (M, N) out_dtype.
    M % 16 == 0, N % 128 == 0."""
    M, K = a.shape
    N = b.shape[1]
    tm = _pick_tile(M, (256, 128, 64, 32, 16))   # capped at 256 (v7x-safe)
    tn = _pick_tile(N, (256, 128))
    if K <= 1024:
        tk, Kp = K, K
    else:
        tk = 512
        Kp = _round_up(K, tk)
        a = jnp.pad(a, ((0, 0), (0, Kp - K)))
        b = jnp.pad(b, ((0, Kp - K), (0, 0)))

    out_bytes = jnp.dtype(out_dtype).itemsize
    need = (2 * (tm * tk * 2 + tk * tn * 2 + tm * tn * out_bytes)
            + tm * tn * 4 + 2 * tn * 4)

    return pl.pallas_call(
        _matmul_bias_kernel,
        out_shape=jax.ShapeDtypeStruct((M, N), out_dtype),
        grid_spec=pltpu.PrefetchScalarGridSpec(
            num_scalar_prefetch=0,
            grid=(M // tm, N // tn, Kp // tk),
            in_specs=[
                pl.BlockSpec((tm, tk), lambda i, j, k: (i, k)),
                pl.BlockSpec((tk, tn), lambda i, j, k: (k, j)),
                pl.BlockSpec((1, tn), lambda i, j, k: (0, j)),
            ],
            out_specs=pl.BlockSpec((tm, tn), lambda i, j, k: (i, j)),
            scratch_shapes=[pltpu.VMEM((tm, tn), jnp.float32)],
        ),
        compiler_params=pltpu.CompilerParams(
            dimension_semantics=("parallel", "parallel", "arbitrary"),
            vmem_limit_bytes=_vmem_limit(need)),
    )(a, b, bias)


# ----------------------------------------------------------------------------
# Kernel 2: LSTM recurrence, 2-D grid (batch block "parallel", time chunk
# "arbitrary").  Precomputed input gates (incl. biases) stream in per time
# chunk; h/c are carried across chunks in f32 VMEM scratch; only h @ W_hh^T
# is done per time step.
# ----------------------------------------------------------------------------
def _lstm_recurrence_kernel(xg_ref, whh_ref, hout_ref, h_sc, c_sc):
    """
    xg_ref  : (Tc, BB, 4*Hp) bf16   x @ W_ih^T + b_ih + b_hh, precomputed
    whh_ref : (Hp, 4*Hp)     bf16   hidden->gates weight (gate-padded, transposed)
    hout_ref: (Tc, BB, Hp)   bf16   hidden states for this (batch, time) block
    h_sc/c_sc: (BB, Hp)      f32    recurrent state, carried across time chunks
    """
    @pl.when(pl.program_id(1) == 0)
    def _():
        h_sc[...] = jnp.zeros_like(h_sc)
        c_sc[...] = jnp.zeros_like(c_sc)

    Tc = xg_ref.shape[0]
    Hp = whh_ref.shape[0]

    def step(t, carry):
        h, c = carry
        gates = (xg_ref[t].astype(jnp.float32)
                 + jnp.dot(h.astype(jnp.bfloat16), whh_ref[...],
                           preferred_element_type=jnp.float32))      # (BB, 4Hp)
        # PyTorch gate order: i, f, g, o.  Hp is a multiple of 128 so every
        # slice below is lane-aligned (whole vregs, no lane shuffles).
        i_g = jax.nn.sigmoid(gates[:, 0 * Hp:1 * Hp])
        f_g = jax.nn.sigmoid(gates[:, 1 * Hp:2 * Hp])
        g_g = jnp.tanh(gates[:, 2 * Hp:3 * Hp])
        o_g = jax.nn.sigmoid(gates[:, 3 * Hp:4 * Hp])
        c_new = f_g * c + i_g * g_g
        h_new = o_g * jnp.tanh(c_new)
        hout_ref[t] = h_new.astype(hout_ref.dtype)
        return (h_new, c_new)

    # Bounded unroll keeps scheduler overlap without exploding live ranges.
    h_f, c_f = jax.lax.fori_loop(0, Tc, step, (h_sc[...], c_sc[...]),
                                 unroll=min(8, Tc))
    h_sc[...] = h_f
    c_sc[...] = c_f


def _lstm_recurrence(xg, whh_t, *, Tp, Tc, Bp, BB, Hp):
    need = (2 * (Tc * BB * 4 * Hp * 2 + Tc * BB * Hp * 2)   # xg + hout, dbl-buf
            + 2 * Hp * 4 * Hp * 2                           # whh
            + 2 * BB * Hp * 4)                              # h/c scratch
    return pl.pallas_call(
        _lstm_recurrence_kernel,
        out_shape=jax.ShapeDtypeStruct((Tp, Bp, Hp), jnp.bfloat16),
        grid_spec=pltpu.PrefetchScalarGridSpec(
            num_scalar_prefetch=0,
            # time axis last -> chunks run in order within each batch block
            grid=(Bp // BB, Tp // Tc),
            in_specs=[
                pl.BlockSpec((Tc, BB, 4 * Hp), lambda b, t: (t, b, 0)),
                pl.BlockSpec((Hp, 4 * Hp), lambda b, t: (0, 0)),
            ],
            out_specs=pl.BlockSpec((Tc, BB, Hp), lambda b, t: (t, b, 0)),
            scratch_shapes=[pltpu.VMEM((BB, Hp), jnp.float32),
                            pltpu.VMEM((BB, Hp), jnp.float32)],
        ),
        # batch blocks independent -> shardable across TensorCores (v7x);
        # time chunks carry state -> "arbitrary".
        compiler_params=pltpu.CompilerParams(
            dimension_semantics=("parallel", "arbitrary"),
            vmem_limit_bytes=_vmem_limit(need)),
    )(xg, whh_t)


# ----------------------------------------------------------------------------
# Full forward
# ----------------------------------------------------------------------------
def decoder_rnn_forward(features, captions, params, *, time_chunk=None):
    """features: (B, E) float32, captions: (B, S) int32 -> logits (B, S, V)."""
    emb_table = params["embedding"]               # (V, E)
    w_ih, w_hh = params["w_ih"], params["w_hh"]   # (4H, E), (4H, H)
    b_ih, b_hh = params["b_ih"], params["b_hh"]   # (4H,), (4H,)
    w_fc, b_fc = params["w_fc"], params["b_fc"]   # (V, H), (V,)

    B, S = captions.shape
    E = emb_table.shape[1]
    H = w_hh.shape[1]
    V = w_fc.shape[0]
    T = S                                          # feature step + S-1 embed steps

    # --- glue: embedding gather + prepend image feature ---------------------
    embeds = jnp.take(emb_table, captions[:, :-1], axis=0)              # (B, S-1, E)
    x = jnp.concatenate([features[:, None, :], embeds], axis=1)         # (B, T, E)
    x = x.astype(jnp.float32)

    # --- TPU-friendly padding / block sizing ---------------------------------
    Hp = _round_up(H, 128)            # lane-aligned gates / lane-dense hidden
    Vp = _round_up(V, 128)            # lane-dense logits
    Bp = _round_up(B, 16)             # bf16 sublane packing
    BB = _pick_batch_block(Bp)        # >=2 blocks when possible (megacore)

    if time_chunk is None:
        # bound the double-buffered (xg + hout) time slab to ~8 MiB of VMEM
        per_t = BB * (4 * Hp + Hp) * 2
        Tc = max(1, min(T, (8 << 20) // (2 * per_t)))
    else:
        Tc = max(1, min(int(time_chunk), T))
    n_chunks = _cdiv(T, Tc)
    Tc = _cdiv(T, n_chunks)           # rebalance so time padding < n_chunks
    Tp = n_chunks * Tc

    x = jnp.pad(x, ((0, Bp - B), (0, 0), (0, 0)))
    x_tbe = jnp.transpose(x, (1, 0, 2)).astype(jnp.bfloat16)            # (T, Bp, E)

    # Fused LSTM weights, zero-padded per gate block (padded hidden units stay
    # exactly zero through the recurrence), transposed for row-major matmul.
    wih_t = _pad_gate_rows(w_ih, H, Hp).T.astype(jnp.bfloat16)          # (E, 4Hp)
    whh_t = _pad_gate_rows(jnp.pad(w_hh, ((0, 0), (0, Hp - H))),
                           H, Hp).T.astype(jnp.bfloat16)                # (Hp, 4Hp)
    b_all = (b_ih + b_hh).reshape(4, H)
    b_all = jnp.pad(b_all, ((0, 0), (0, Hp - H))).reshape(1, 4 * Hp)
    b_all = b_all.astype(jnp.float32)                                   # (1, 4Hp)

    wfc_t = jnp.pad(w_fc.T, ((0, Hp - H), (0, Vp - V))).astype(jnp.bfloat16)  # (Hp, Vp)
    bfc = jnp.pad(b_fc, (0, Vp - V))[None, :].astype(jnp.float32)             # (1, Vp)

    # --- 1) hoisted input projection (time-independent, one tiled matmul) ---
    xg = _matmul_bias(x_tbe.reshape(T * Bp, E), wih_t, b_all,
                      out_dtype=jnp.bfloat16)                           # (T*Bp, 4Hp)
    xg = xg.reshape(T, Bp, 4 * Hp)
    xg = jnp.pad(xg, ((0, Tp - T), (0, 0), (0, 0)))                     # pad time

    # --- 2) serial LSTM recurrence (only h @ W_hh^T inside the time loop) ---
    h_slab = _lstm_recurrence(xg, whh_t, Tp=Tp, Tc=Tc, Bp=Bp, BB=BB, Hp=Hp)
    h_slab = h_slab[:T]                                                 # (T, Bp, Hp) bf16

    # --- 3) hoisted vocab projection (tiled matmul, f32 output) -------------
    logits = _matmul_bias(h_slab.reshape(T * Bp, Hp), wfc_t, bfc,
                          out_dtype=jnp.float32)                        # (T*Bp, Vp)
    logits = logits.reshape(T, Bp, Vp)

    # back to batch_first, drop padding
    return jnp.transpose(logits, (1, 0, 2))[:B, :, :V]                  # (B, T, V)


# ----------------------------------------------------------------------------
# Pure-JAX reference (f32 lax.scan LSTM) for correctness checking
# ----------------------------------------------------------------------------
def _reference_forward(features, captions, params):
    emb = jnp.take(params["embedding"], captions[:, :-1], axis=0)
    x = jnp.concatenate([features[:, None, :], emb], axis=1)            # (B, T, E)
    x = jnp.transpose(x, (1, 0, 2))                                     # (T, B, E)
    H = params["w_hh"].shape[1]
    b = params["b_ih"] + params["b_hh"]

    def step(carry, x_t):
        h, c = carry
        gates = x_t @ params["w_ih"].T + h @ params["w_hh"].T + b
        i = jax.nn.sigmoid(gates[:, 0 * H:1 * H])
        f = jax.nn.sigmoid(gates[:, 1 * H:2 * H])
        g = jnp.tanh(gates[:, 2 * H:3 * H])
        o = jax.nn.sigmoid(gates[:, 3 * H:4 * H])
        c_new = f * c + i * g
        h_new = o * jnp.tanh(c_new)
        return (h_new, c_new), h_new

    B = features.shape[0]
    h0 = jnp.zeros((B, H), jnp.float32)
    (_, _), hs = jax.lax.scan(step, (h0, h0), x)                        # (T, B, H)
    logits = hs @ params["w_fc"].T + params["b_fc"]                     # (T, B, V)
    return jnp.transpose(logits, (1, 0, 2))


def init_params(key, embed_size, hidden_size, vocab_size):
    ks = jax.random.split(key, 7)
    s = 1.0 / jnp.sqrt(hidden_size)
    return {
        "embedding": jax.random.normal(ks[0], (vocab_size, embed_size), jnp.float32),
        "w_ih": jax.random.uniform(ks[1], (4 * hidden_size, embed_size), jnp.float32, -s, s),
        "w_hh": jax.random.uniform(ks[2], (4 * hidden_size, hidden_size), jnp.float32, -s, s),
        "b_ih": jax.random.uniform(ks[3], (4 * hidden_size,), jnp.float32, -s, s),
        "b_hh": jax.random.uniform(ks[4], (4 * hidden_size,), jnp.float32, -s, s),
        "w_fc": jax.random.uniform(ks[5], (vocab_size, hidden_size), jnp.float32, -s, s),
        "b_fc": jax.random.uniform(ks[6], (vocab_size,), jnp.float32, -s, s),
    }


if __name__ == "__main__":
    # Small, module-consistent shapes.
    batch = 2
    embed_size = 32
    hidden_size = 32
    vocab_size = 128
    seq_len = 8          # captions length S -> LSTM sees T = S steps

    key = jax.random.PRNGKey(0)
    kp, kf, kc = jax.random.split(key, 3)

    params = init_params(kp, embed_size, hidden_size, vocab_size)
    features = jax.random.normal(kf, (batch, embed_size), jnp.float32)
    captions = jax.random.randint(kc, (batch, seq_len), 0, vocab_size, jnp.int32)

    ref = _reference_forward(features, captions, params)

    # Auto time-chunking (single chunk at these tiny shapes) ...
    out = jax.block_until_ready(decoder_rnn_forward(features, captions, params))
    # ... plus an explicitly chunked run to exercise the VMEM-scratch h/c carry
    # across time chunks (grid = (1, 2) here).
    out_chunked = jax.block_until_ready(
        decoder_rnn_forward(features, captions, params, time_chunk=4))

    assert out.shape == (batch, seq_len, vocab_size), out.shape
    # bf16 matmul operands with f32 accumulation -> looser tolerance than f32.
    assert jnp.allclose(out, ref, atol=5e-2, rtol=5e-2), "mismatch vs. reference"
    assert jnp.allclose(out_chunked, ref, atol=5e-2, rtol=5e-2), "chunked mismatch"
    assert jnp.allclose(out, out_chunked, atol=1e-3, rtol=1e-3), \
        "time-chunked recurrence disagrees with single-chunk"

    print("KERNEL_OK")
</pallas_src>

<mosaic_0001>
module attributes {stable_mosaic.version = 11 : i64} {
  func.func @_matmul_bias_kernel(%arg0: i32, %arg1: i32, %arg2: i32, %arg3: memref<128x32xbf16, #tpu.memory_space<vmem>>, %arg4: memref<32x256xbf16, #tpu.memory_space<vmem>>, %arg5: memref<1x256xf32, #tpu.memory_space<vmem>>, %arg6: memref<128x256xbf16, #tpu.memory_space<vmem>>, %arg7: memref<128x256xf32, #tpu.memory_space<vmem>>) attributes {dimension_semantics = [#tpu.dimension_semantics<parallel>, #tpu.dimension_semantics<parallel>, #tpu.dimension_semantics<arbitrary>], iteration_bounds = array<i64: 1, 2, 1>, scalar_prefetch = 0 : i64, scratch_operands = 1 : i64, tpu.core_type = #tpu.core_type<tc>, window_params = [{transform_indices = @transform_0, window_bounds = array<i64: 128, 32>}, {transform_indices = @transform_1, window_bounds = array<i64: 32, 256>}, {transform_indices = @transform_2, window_bounds = array<i64: 1, 256>}, {transform_indices = @transform_3, window_bounds = array<i64: 128, 256>}]} {
    %c0_i32 = arith.constant 0 : i32
    %0 = arith.cmpi eq, %arg2, %c0_i32 : i32
    %1 = arith.extui %0 : i1 to i32
    %c0_i32_0 = arith.constant 0 : i32
    %2 = arith.cmpi ne, %1, %c0_i32_0 : i32
    scf.if %2 {
      %cst_10 = arith.constant 0.000000e+00 : f32
      %12 = vector.broadcast %cst_10 : f32 to vector<128x256xf32>
      %c0_11 = arith.constant 0 : index
      %c0_12 = arith.constant 0 : index
      %13 = vector.load %arg7[%c0_11, %c0_12] : memref<128x256xf32, #tpu.memory_space<vmem>>, vector<128x256xf32>
      tpu.vector_store %arg7[%c0_11, %c0_12], %12 {strides = array<i32>} : memref<128x256xf32, #tpu.memory_space<vmem>>, vector<128x256xf32>,
    } else {
    }
    %c0 = arith.constant 0 : index
    %c0_1 = arith.constant 0 : index
    %3 = vector.load %arg7[%c0, %c0_1] : memref<128x256xf32, #tpu.memory_space<vmem>>, vector<128x256xf32>
    %c0_2 = arith.constant 0 : index
    %c0_3 = arith.constant 0 : index
    %4 = vector.load %arg3[%c0_2, %c0_3] : memref<128x32xbf16, #tpu.memory_space<vmem>>, vector<128x32xbf16>
    %c0_4 = arith.constant 0 : index
    %c0_5 = arith.constant 0 : index
    %5 = vector.load %arg4[%c0_4, %c0_5] : memref<32x256xbf16, #tpu.memory_space<vmem>>, vector<32x256xbf16>
    %cst = arith.constant dense<0.000000e+00> : vector<128x256xf32>
    %6 = tpu.matmul %4, %5, %cst {dimension_numbers = #tpu.dot_dimension_numbers<[1], [0], [0], [1], [0, 0, 1, 1], [], []>} : vector<128x32xbf16>, vector<32x256xbf16>, vector<128x256xf32> -> vector<128x256xf32>
    %7 = arith.addf %3, %6 : vector<128x256xf32>
    %c0_6 = arith.constant 0 : index
    %c0_7 = arith.constant 0 : index
    %8 = vector.load %arg7[%c0_6, %c0_7] : memref<128x256xf32, #tpu.memory_space<vmem>>, vector<128x256xf32>
    tpu.vector_store %arg7[%c0_6, %c0_7], %7 {strides = array<i32>} : memref<128x256xf32, #tpu.memory_space<vmem>>, vector<128x256xf32>,
    %c0_i32_8 = arith.constant 0 : i32
    %9 = arith.cmpi eq, %arg2, %c0_i32_8 : i32
    %10 = arith.extui %9 : i1 to i32
    %c0_i32_9 = arith.constant 0 : i32
    %11 = arith.cmpi ne, %10, %c0_i32_9 : i32
    scf.if %11 {
      %c0_10 = arith.constant 0 : index
      %c0_11 = arith.constant 0 : index
      %12 = vector.load %arg7[%c0_10, %c0_11] : memref<128x256xf32, #tpu.memory_space<vmem>>, vector<128x256xf32>
      %c0_12 = arith.constant 0 : index
      %c0_13 = arith.constant 0 : index
      %13 = vector.load %arg5[%c0_12, %c0_13] : memref<1x256xf32, #tpu.memory_space<vmem>>, vector<1x256xf32>
      %14 = vector.broadcast %13 : vector<1x256xf32> to vector<128x256xf32>
      %15 = arith.addf %12, %14 : vector<128x256xf32>
      %16 = arith.truncf %15 : vector<128x256xf32> to vector<128x256xbf16>
      %c0_14 = arith.constant 0 : index
      %c0_15 = arith.constant 0 : index
      %17 = vector.load %arg6[%c0_14, %c0_15] : memref<128x256xbf16, #tpu.memory_space<vmem>>, vector<128x256xbf16>
      tpu.vector_store %arg6[%c0_14, %c0_15], %16 {strides = array<i32>} : memref<128x256xbf16, #tpu.memory_space<vmem>>, vector<128x256xbf16>,
    } else {
    }
    return
  }
  func.func @transform_0(%arg0: i32, %arg1: i32, %arg2: i32) -> (i32, i32) {
    %c0_i32 = arith.constant 0 : i32
    return %arg0, %arg2 : i32, i32
  }
  func.func @transform_1(%arg0: i32, %arg1: i32, %arg2: i32) -> (i32, i32) {
    %c0_i32 = arith.constant 0 : i32
    return %arg2, %arg1 : i32, i32
  }
  func.func @transform_2(%arg0: i32, %arg1: i32, %arg2: i32) -> (i32, i32) {
    %c0_i32 = arith.constant 0 : i32
    %c0_i32_0 = arith.constant 0 : i32
    return %c0_i32, %arg1 : i32, i32
  }
  func.func @transform_3(%arg0: i32, %arg1: i32, %arg2: i32) -> (i32, i32) {
    %c0_i32 = arith.constant 0 : i32
    return %arg0, %arg1 : i32, i32
  }
}

</mosaic_0001>

<bundles_post_ra>
// kernel: tpu_custom_call.1
= control target key start
LH: loop header
LB: loop body
LE: loop exit
PB: predicated region body
PF: predicated region fallthrough
CT: control target
= control target key end

     0   :  { %8 = vsyncpa [#allocation5], 0  ;;  %s1435_s0 = inlined_call_operand.vmem [shape: bf16[128,32], index: 0, kind: input, shape index: {}]   ;;  %s1436_s1 = inlined_call_operand.vmem [shape: bf16[32,512], index: 1, kind: input, shape index: {}]   ;;  %s1437_s2 = inlined_call_operand.vmem [shape: f32[1,512], index: 2, kind: input, shape index: {}]   ;;  %s1438_s3 = inlined_call_operand.hbm [shape: bf16[128,512], index: 3, kind: output, shape index: {}]  }
   0x1   :  { %10 = vsyncpa [#allocation5 + $0x1], 0  ;;  %s1221_s12 = smov 0   ;;  %s1223_s13 = smov 0  }
   0x2   :  { %s1225_s14 = smov 0   ;;  %s1227_s15 = smov 0  }
   0x3   :  { %s1229_s16 = smov 0   ;;  %s1231_s17 = smov 0  }
   0x4 LB: > { %s970_s18 = sadd.s32 4294967295, %s1194_s17   ;;  %s971_s19 = sadd.s32 4294967294, %s1194_s17   ;;  %s1194_s17 = sphi %s1231_s17, %s16_s17   ;;  %s1190_s16 = sphi %s1229_s16, %s1445_s16   ;;  %s1186_s15 = sphi %s1227_s15, %s1444_s15   ;;  %s1182_s14 = sphi %s1225_s14, %s1443_s14   ;;  %s1178_s13 = sphi %s1223_s13, %s1442_s13   ;;  %s1174_s12 = sphi %s1221_s12, %s1441_s12  }
   0x5   : > { %s31_s20 = sadd.s32 1, %s1190_s16  ;;  %s72_s21 = sadd.s32 1, %s1182_s14 }
   0x6   : > { %p33_p0 = scmp.ge.s32.totalorder %s31_s20, 2  ;;  %p79_p1 = scmp.ne.s32.totalorder %s1182_s14, %s1178_s13 }
   0x7   : > { %p80_p2 = scmp.eq.s32.totalorder %s1194_s17, 0  ;;  %p137_p3 = scmp.eq.s32.totalorder %s970_s18, 1 }
   0x8   : > { %s1447_s20 = smov (%p33_p0, %s31_s20), 0  ;;  %p142_p6 = scmp.ne.s32.totalorder %s1178_s13, %s1174_s12 }
   0x9   : > { %p81_p4 = por %p80_p2, %p79_p1  ;;  %p1260_p5 = por %p137_p3, %p79_p1 }
   0xa   : > { %s68_s23 = ssub.s32 %s1190_s16, %s1447_s20  ;;  %p143_p8 = scmp.eq.s32.totalorder %s971_s19, 1 }
   0xb   : > { %p70_p7 = scmp.eq.s32.totalorder %s68_s23, 0  ;;  %p974_p10 = scmp.ge.s32.totalorder %s1194_s17, 2 }
   0xc   : > { %p1271_p9 = por %p143_p8, %p142_p6 }
   0xd   : > { %s1269_s24 = scalar_select %p70_p7, %s1182_s14, %s72_s21  }
   0xe   : > { %171 = sbr.rel (%p974_p10) target bundleno = 25 (0x19), region = 20 }
  0x13   : > { %174 = sbr.rel (!%p81_p4) target bundleno = 25 (0x19), region = 24  ;;  %s176_s26 = sand.u32 (%p81_p4), 1, %s1182_s14  }
  0x14   : > { %s1023_s27 = sshll.u32 (%p81_p4), %s1190_s16, 3  ;;  %s975_s28 = sshll.u32 (%p81_p4), %s176_s26, 5 }
  0x15   : > { %s184_s4 = scalar_lea.vmem (%p81_p4), %s1436_s1, %s1023_s27  ;;  %s178_s5 = scalar_lea.vmem (%p81_p4), [#allocation3], %s975_s28 }
  0x16   : > { %v219_v0 = vld [vmem:[%s184_s4] sm:$0xff] (%p81_p4)  ;;  %v221_v1 = vld [vmem:[%s184_s4 + $0x10] sm:$0xff] (%p81_p4) }
  0x17   : > { %v223_v2 = vld [vmem:[%s184_s4 + $0x20] sm:$0xff] (%p81_p4)  ;;  %220 = vst [vmem:[%s178_s5] sm:$0xff] (%p81_p4), %v219_v0  ;;  %222 = vst [vmem:[%s178_s5 + $0x8] sm:$0xff] (%p81_p4), %v221_v1  ;;  %v225_v3 = vld [vmem:[%s184_s4 + $0x30] sm:$0xff] (%p81_p4) }
  0x18   : > { %224 = vst [vmem:[%s178_s5 + $0x10] sm:$0xff] %v223_v2  ;;  %226 = vst [vmem:[%s178_s5 + $0x18] sm:$0xff] %v225_v3 }
  0x19 PF: > { %p978_p11 = scmp.ge.s32.totalorder %s1194_s17, 1  ;;  %p239_p12 = scmp.lt.s32.totalorder %s1194_s17, 3 }
  0x1b   : > { %p240_p13 = pnand %p978_p11, %p239_p12 }
  0x1c   : > { %s1286_s6 = sand.u32 (!%p240_p13), 1, %s1178_s13   ;;  %s981_s9 = sshll.u32 (!%p240_p13), %s1186_s15, 1 }
  0x1d   : > { %243 = sbr.rel (%p240_p13) target bundleno = 286 (0x11e), region = 66  ;;  %s979_s7 = sshll.u32 (!%p240_p13), %s1286_s6, 5 }
  0x1e   : > { %s248_s8 = scalar_lea.vmem (!%p240_p13), [#allocation3], %s979_s7  ;;  %p293_p0 = scmp.lt.s32.totalorder (!%p240_p13), %s981_s9, 3 }
  0x1f   : > { %s980_s19 = sshll.u32 (!%p240_p13), %s1286_s6, 7  ;;  %s1040_s23 = sshll.u32 (!%p240_p13), %s1186_s15, 7 }
  0x20   : > { %s1334_s21 = scalar_lea.vmem (!%p240_p13), [#allocation4], %s980_s19  ;;  %s1383_s28 = scalar_lea.hbm (!%p240_p13), %s1438_s3, %s1040_s23 }
  0x21   : > { %s858_s26 = sshll.u32 (!%p240_p13), %s1334_s21, 4  ;;  %s842_s29 = scalar_lea.sflag (!%p240_p13), [#allocation5], %s1286_s6  ;;  %s1385_s26 = int_to_ptr.vmem [resolvable:$true] %s858_s26 }
  0x22   : > { %v1196_v4 = vmov 0   ;;  %v1104_v5 = vld [vmem:[%s248_s8 + $0x14] ss:$8 sps:$4 sm:$0xff]   ;;  %v1106_v6 = vld [vmem:[%s248_s8 + $0x10] ss:$8 sps:$4 sm:$0xff]   ;;  %v1110_v9 = vld [vmem:[%s1435_s0] sm:$0xff]   ;;  %v687_v17 = vlaneseq }
  0x23   : > { %505 = vmatprep.mubr.bf16.mxu0 %v1196_v4  ;;  %545 = vmatprep.mubr.bf16.mxu1 %v1196_v4  ;;  %v1107_v7 = vld [vmem:[%s248_s8 + $0x4] ss:$8 sps:$4 sm:$0xff]   ;;  %v1109_v8 = vld [vmem:[%s248_s8] ss:$8 sps:$4 sm:$0xff]   ;;  %vm448_vm0 = vcmask 261120   ;;  %v1114_v13 = vld [vmem:[%s1435_s0 + $0x10] sm:$0xff]  }
  0x24   : > { %485 = vmatprep.subr.bf16.mxu0 %v1104_v5  ;;  %1041 = vmatprep.subr.bf16.mxu1 %v1104_v5  ;;  %v1111_v10 = vld [vmem:[%s1435_s0 + $0x20] sm:$0xff]   ;;  %v1112_v11 = vld [vmem:[%s1435_s0 + $0x8] sm:$0xff]   ;;  %v1115_v14 = vld [vmem:[%s1435_s0 + $0x30] sm:$0xff]   ;;  %s1449_s9 = smov (!%p293_p0, %s981_s9), 3  ;;  %v688_v18 = vshrl.u32 %v687_v17, 7  ;;  %s1118_s30 = scalar_lea.vmem %s1385_s26, 2048 }
  0x25   : > { %486 = vmatpush1.bf16.msra.mxu0 %v1106_v6  ;;  %1043 = vmatpush1.bf16.msra.mxu1 %v1106_v6  ;;  %v1113_v12 = vld [vmem:[%s1435_s0 + $0x28] sm:$0xff]   ;;  %v1116_v15 = vld [vmem:[%s1435_s0 + $0x18] sm:$0xff]   ;;  %s295_s18 = scalar_lea.vmem %s1437_s2, %s1449_s9  ;;  %p1119_p1 = scmp.ne.s32.totalorder %s1385_s26, %s1118_s30 }
  0x26   : > { %487 = vmatprep.subr.bf16.mxu0 %v1107_v7  ;;  %1042 = vmatprep.subr.bf16.mxu1 %v1107_v7  ;;  %v1117_v16 = vld [vmem:[%s1435_s0 + $0x38] sm:$0xff]   ;;  %v689_v19 = vsub.s32 0, %v688_v18  ;;  %v693_v20 = vsub.s32 1, %v688_v18  ;;  %v685_v21 = vld [vmem:[%s295_s18] sm:$0x3]  ;;  %s1197_s4 = smov [#allocation4]  }
  0x27   : > { %p1120_p2 = pnand %p1119_p1, %p1260_p5  ;;  %s1122_s5 = sshll.u32 %s1197_s4, 4  ;;  %s1123_s5 = int_to_ptr.vmem [resolvable:$false] %s1122_s5 }
  0x28   : > { %v1325_v22 = vrot.slane %v685_v21, %v689_v19  ;;  %v1327_v23 = vrot.slane %v685_v21, %v693_v20  ;;  %s1124_s7 = scalar_lea.vmem %s1123_s5, 4096  ;;  %p1125_p4 = scmp.lt.s32.totalorder %s1385_s26, %s1123_s5 }
  0x29   : > { %488 = vmatpush1.bf16.msra.mxu0 %v1109_v8  ;;  %1044 = vmatpush1.bf16.msra.mxu1 %v1109_v8  ;;  %p1121_p3 = pneg %p1120_p2  ;;  %p1126_p6 = scmp.lt.s32.totalorder %s1124_s7, %s1118_s30 }
  0x2b   : > { %p1127_p7 = por %p1126_p6, %p1125_p4 }
  0x2c   : > { %994 = vmatmul.mubr.msk.bf16.vlgmr.msra.gmra.mxu0 %vm448_vm0, %v1110_v9  ;;  %998 = vmatmul.mubr.msk.bf16.vlgmr.msra.gmra.mxu1 %vm448_vm0, %v1111_v10 }
  0x2d   : > { %515 = vmatprep.mubr.bf16.mxu0 %v1196_v4  ;;  %555 = vmatprep.mubr.bf16.mxu1 %v1196_v4  ;;  %p1128_p8 = pnand %p1127_p7, %p1121_p3 }
  0x34   : > { %995 = vmatmul.mubr.msk.bf16.gmra.mxu0 %vm448_vm0, %v1112_v11  ;;  %999 = vmatmul.mubr.msk.bf16.gmra.mxu1 %vm448_vm0, %v1113_v12 }
  0x35   : > { %525 = vmatprep.mubr.bf16.mxu0 %v1196_v4  ;;  %565 = vmatprep.mubr.bf16.mxu1 %v1196_v4 }
  0x3c   : > { %996 = vmatmul.mubr.msk.bf16.gmra.mxu0 %vm448_vm0, %v1114_v13  ;;  %1000 = vmatmul.mubr.msk.bf16.gmra.mxu1 %vm448_vm0, %v1115_v14 }
  0x3d   : > { %535 = vmatprep.mubr.bf16.mxu0 %v1196_v4  ;;  %575 = vmatprep.mubr.bf16.mxu1 %v1196_v4 }
  0x44   : > { %997 = vmatmul.mubr.msk.bf16.gmra.mxu0 %vm448_vm0, %v1116_v15  ;;  %1001 = vmatmul.mubr.msk.bf16.gmra.mxu1 %vm448_vm0, %v1117_v16 }
  0xec   : > { %v507_v24 = vpop.f32.mrf.mxu0  ;;  %v547_v25 = vpop.f32.mrf.mxu1 }
  0xed   : > { %v697_v28 = vadd.f32 %v1325_v22, %v507_v24  ;;  %v713_v29 = vadd.f32 %v1325_v22, %v547_v25 }
  0xee   : > { %v509_v26 = vpop.f32.mrf.mxu0  ;;  %v549_v27 = vpop.f32.mrf.mxu1 }
  0xef   : > { %v698_v30 = vadd.f32 %v1327_v23, %v509_v26  ;;  %v714_v31 = vadd.f32 %v1327_v23, %v549_v27 }
  0xf0   : > { %v511_v32 = vpop.f32.mrf.mxu0  ;;  %v551_v33 = vpop.f32.mrf.mxu1 }
  0xf1   : > { %v1024_v34 = vpack.c.bf16 %v698_v30, %v697_v28  ;;  %v1032_v35 = vpack.c.bf16 %v714_v31, %v713_v29  ;;  %v699_v38 = vadd.f32 %v1325_v22, %v511_v32  ;;  %v715_v39 = vadd.f32 %v1325_v22, %v551_v33 }
  0xf2   : > { %v513_v36 = vpop.f32.mrf.mxu0  ;;  %v553_v37 = vpop.f32.mrf.mxu1 }
  0xf3   : > { %825 = vst [vmem:[%s1334_s21] sm:$0xff] %v1024_v34  ;;  %833 = vst [vmem:[%s1334_s21 + $0x40] sm:$0xff] %v1032_v35  ;;  %v700_v40 = vadd.f32 %v1327_v23, %v513_v36  ;;  %v716_v41 = vadd.f32 %v1327_v23, %v553_v37 }
  0xf4   : > { %v517_v42 = vpop.f32.mrf.mxu0  ;;  %v557_v43 = vpop.f32.mrf.mxu1 }
  0xf5   : > { %v1025_v44 = vpack.c.bf16 %v700_v40, %v699_v38  ;;  %v1033_v45 = vpack.c.bf16 %v716_v41, %v715_v39  ;;  %v701_v48 = vadd.f32 %v1325_v22, %v517_v42  ;;  %v717_v49 = vadd.f32 %v1325_v22, %v557_v43 }
  0xf6   : > { %v519_v46 = vpop.f32.mrf.mxu0  ;;  %v559_v47 = vpop.f32.mrf.mxu1 }
  0xf7   : > { %826 = vst [vmem:[%s1334_s21 + $0x8] sm:$0xff] %v1025_v44  ;;  %834 = vst [vmem:[%s1334_s21 + $0x48] sm:$0xff] %v1033_v45  ;;  %v702_v50 = vadd.f32 %v1327_v23, %v519_v46  ;;  %v718_v51 = vadd.f32 %v1327_v23, %v559_v47 }
  0xf8   : > { %v521_v52 = vpop.f32.mrf.mxu0  ;;  %v561_v53 = vpop.f32.mrf.mxu1 }
  0xf9   : > { %v1026_v54 = vpack.c.bf16 %v702_v50, %v701_v48  ;;  %v1034_v55 = vpack.c.bf16 %v718_v51, %v717_v49  ;;  %v703_v58 = vadd.f32 %v1325_v22, %v521_v52  ;;  %v719_v59 = vadd.f32 %v1325_v22, %v561_v53 }
  0xfa   : > { %v523_v56 = vpop.f32.mrf.mxu0  ;;  %v563_v57 = vpop.f32.mrf.mxu1 }
  0xfb   : > { %827 = vst [vmem:[%s1334_s21 + $0x10] sm:$0xff] %v1026_v54  ;;  %835 = vst [vmem:[%s1334_s21 + $0x50] sm:$0xff] %v1034_v55  ;;  %v704_v60 = vadd.f32 %v1327_v23, %v523_v56  ;;  %v720_v61 = vadd.f32 %v1327_v23, %v563_v57 }
  0xfc   : > { %v527_v62 = vpop.f32.mrf.mxu0  ;;  %v567_v63 = vpop.f32.mrf.mxu1 }
  0xfd   : > { %v1027_v0 = vpack.c.bf16 %v704_v60, %v703_v58  ;;  %v1035_v1 = vpack.c.bf16 %v720_v61, %v719_v59  ;;  %v705_v4 = vadd.f32 %v1325_v22, %v527_v62  ;;  %v721_v5 = vadd.f32 %v1325_v22, %v567_v63 }
  0xfe   : > { %v529_v2 = vpop.f32.mrf.mxu0  ;;  %v569_v3 = vpop.f32.mrf.mxu1 }
  0xff   : > { %828 = vst [vmem:[%s1334_s21 + $0x18] sm:$0xff] %v1027_v0  ;;  %836 = vst [vmem:[%s1334_s21 + $0x58] sm:$0xff] %v1035_v1  ;;  %v706_v6 = vadd.f32 %v1327_v23, %v529_v2  ;;  %v722_v7 = vadd.f32 %v1327_v23, %v569_v3 }
 0x100   : > { %v531_v8 = vpop.f32.mrf.mxu0  ;;  %v571_v9 = vpop.f32.mrf.mxu1 }
 0x101   : > { %v1028_v10 = vpack.c.bf16 %v706_v6, %v705_v4  ;;  %v1036_v11 = vpack.c.bf16 %v722_v7, %v721_v5  ;;  %v707_v14 = vadd.f32 %v1325_v22, %v531_v8  ;;  %v723_v15 = vadd.f32 %v1325_v22, %v571_v9 }
 0x102   : > { %v533_v12 = vpop.f32.mrf.mxu0  ;;  %v573_v13 = vpop.f32.mrf.mxu1 }
 0x103   : > { %829 = vst [vmem:[%s1334_s21 + $0x20] sm:$0xff] %v1028_v10  ;;  %837 = vst [vmem:[%s1334_s21 + $0x60] sm:$0xff] %v1036_v11  ;;  %v708_v16 = vadd.f32 %v1327_v23, %v533_v12  ;;  %v724_v17 = vadd.f32 %v1327_v23, %v573_v13 }
 0x104   : > { %v537_v18 = vpop.f32.mrf.mxu0  ;;  %v577_v19 = vpop.f32.mrf.mxu1 }
 0x105   : > { %v1029_v20 = vpack.c.bf16 %v708_v16, %v707_v14  ;;  %v1037_v21 = vpack.c.bf16 %v724_v17, %v723_v15  ;;  %v709_v26 = vadd.f32 %v1325_v22, %v537_v18  ;;  %v725_v27 = vadd.f32 %v1325_v22, %v577_v19 }
 0x106   : > { %v539_v24 = vpop.f32.mrf.mxu0  ;;  %v579_v25 = vpop.f32.mrf.mxu1 }
 0x107   : > { %830 = vst [vmem:[%s1334_s21 + $0x28] sm:$0xff] %v1029_v20  ;;  %838 = vst [vmem:[%s1334_s21 + $0x68] sm:$0xff] %v1037_v21  ;;  %v710_v28 = vadd.f32 %v1327_v23, %v539_v24  ;;  %v726_v29 = vadd.f32 %v1327_v23, %v579_v25 }
 0x108   : > { %v541_v30 = vpop.f32.mrf.mxu0  ;;  %v581_v31 = vpop.f32.mrf.mxu1 }
 0x109   : > { %v1030_v32 = vpack.c.bf16 %v710_v28, %v709_v26  ;;  %v1038_v33 = vpack.c.bf16 %v726_v29, %v725_v27  ;;  %v711_v36 = vadd.f32 %v1325_v22, %v541_v30  ;;  %v727_v37 = vadd.f32 %v1325_v22, %v581_v31 }
 0x10a   : > { %v543_v34 = vpop.f32.mrf.mxu0  ;;  %v583_v35 = vpop.f32.mrf.mxu1 }
 0x10b   : > { %831 = vst [vmem:[%s1334_s21 + $0x30] sm:$0xff] %v1030_v32  ;;  %839 = vst [vmem:[%s1334_s21 + $0x70] sm:$0xff] %v1038_v33  ;;  %v712_v38 = vadd.f32 %v1327_v23, %v543_v34  ;;  %v728_v39 = vadd.f32 %v1327_v23, %v583_v35 }
 0x10d   : > { %v1031_v40 = vpack.c.bf16 %v712_v38, %v711_v36  ;;  %v1039_v41 = vpack.c.bf16 %v728_v39, %v727_v37 }
 0x10f   : > { %832 = vst [vmem:[%s1334_s21 + $0x38] sm:$0xff] %v1031_v40  ;;  %840 = vst [vmem:[%s1334_s21 + $0x78] sm:$0xff] %v1039_v41 }
 0x110   : > { %1131 = shalt.err (!%p1128_p8)
}
 0x111   : > { %s1132_s8 = scalar_lea.hbm %s1383_s28, 2048  ;;  %s1136_s11 = scalar_lea.hbm %s1438_s3, 4096 }
 0x112   : > { %p1133_p11 = scmp.ne.s32.totalorder %s1383_s28, %s1132_s8  ;;  %p1137_p0 = scmp.lt.s32.totalorder %s1383_s28, %s1438_s3 }
 0x113   : > { %p1138_p1 = scmp.lt.s32.totalorder %s1136_s11, %s1132_s8 }
 0x114   : > { %p1134_p12 = pnand %p1133_p11, %p1260_p5 }
 0x115   : > { %p1139_p2 = por %p1138_p1, %p1137_p0 }
 0x116   : > { %p1135_p13 = pneg %p1134_p12 }
 0x118   : > { %p1140_p3 = pnand %p1139_p2, %p1135_p13 }
 0x11a   : > { %1143 = shalt.err (!%p1140_p3)
}
 0x11b   : > { %s1198_s21 = smov 128   ;;  %s1199_s23 = smov 256  }
 0x11c   : > { %s1200_s15 = smov 8  }
 0x11d   : > { %1045 = dma.vmem_to_hbm [thread:$0]  (%p1260_p5), %s1385_s26, 2048, %s1383_s28, %s842_s29, %s1198_s21, %s1199_s23, %s1200_s15  }
 0x11e PF: > { %s873_s27 = sand.u32 1, %s1174_s12   ;;  %p1048_p4 = pnand %p974_p10, %p1271_p9 }
 0x11f   : > { %s874_s30 = scalar_lea.sflag [#allocation5], %s873_s27 }
 0x120   : > { %p1049_p6 = pneg %p1048_p4 }
 0x122   : > { %1169 = dma.done.wait (%p1049_p6), %s874_s30, 2048  }
 0x123   : > { %1171 = vsyncadd (%p1049_p6), %s874_s30, 4294965248  ;;  %s16_s17 = sadd.s32 1, %s1194_s17   ;;  %s1441_s12 = smov %s1178_s13 }
 0x124   : > { %p13_p7 = scmp.ge.s32.totalorder %s16_s17, 4   ;;  %s1442_s13 = smov %s1182_s14 }
 0x125   : > { %s1443_s14 = smov %s1269_s24  ;;  %s1444_s15 = smov %s1190_s16 }
 0x126   : > { %s1445_s16 = smov %s1447_s20  ;;  %15 = sbr.rel (!%p13_p7) target bundleno = 4 (0x4), region = 124 }
 0x12b   :  { %879 = vsyncpa [#allocation5], 1 }
 0x12c   :  { %881 = vsyncpa [#allocation5 + $0x1], 1 }

</bundles_post_ra>
